<compile_context>
chip_gen: v5e
topology: v5e:2x2
jax: 0.10.0
libtpu: 0.0.40
codegen_flags: <defaults>
</compile_context>

<pallas_src>
import functools

import jax
import jax.numpy as jnp
from jax.experimental import pallas as pl
from jax.experimental.pallas import tpu as pltpu

LANE = 128


def _round_up(n: int, m: int) -> int:
    return ((n + m - 1) // m) * m


def mlp_kernel(x_ref, w_ref, b_ref, o_ref):
    # y = relu(x @ W_fused + b_fused)
    # bf16 MXU operands, f32 accumulate, f32 epilogue, bf16 store.
    y = jnp.dot(x_ref[...], w_ref[...], preferred_element_type=jnp.float32)
    y = jnp.maximum(y + b_ref[...], 0.0)
    o_ref[...] = y.astype(o_ref.dtype)


def fuse_mlp_params(w1, b1, w2, b2, out_lanes=LANE):
    """One-time prep: collapse Linear(20,256) -> Linear(256,10) (there is no
    hidden activation) into one lane-padded bf16 weight and one f32 bias."""
    in_f = w1.shape[0]
    out_f = w2.shape[1]
    w1f = w1.astype(jnp.float32)
    w2f = w2.astype(jnp.float32)
    w_fused = jnp.dot(w1f, w2f)                                        # (20, 10) f32
    b_fused = (jnp.dot(b1.reshape(1, -1).astype(jnp.float32), w2f)
               + b2.reshape(1, -1).astype(jnp.float32))                # (1, 10) f32
    out_p = _round_up(out_f, out_lanes)
    w_p = jnp.zeros((in_f, out_p), jnp.bfloat16).at[:, :out_f].set(
        w_fused.astype(jnp.bfloat16))
    b_p = jnp.zeros((1, out_p), jnp.float32).at[:, :out_f].set(b_fused)
    return w_p, b_p, out_f


def _pick_batch_tile(batch: int, block_batch: int) -> int:
    """Batch tile: multiple of 16 (bf16 sublane packing), capped at block_batch.
    If the whole batch would fit in one tile but is large enough to split,
    halve it so the 'parallel' grid axis has >= 2 steps (v7x's 2 TensorCores)."""
    b16 = _round_up(batch, 16)
    tb = min(_round_up(block_batch, 16), b16)
    if tb >= b16 and b16 >= 64:
        tb = _round_up(b16 // 2, 16)
    return tb


@functools.partial(jax.jit, static_argnames=("out_features", "block_batch"))
def mlp_forward(x, w_fused, b_fused, *, out_features, block_batch=1024):
    """y = relu(x @ w_fused + b_fused) as one batch-tiled Pallas call.

    `w_fused` (in_f, 128) bf16 and `b_fused` (1, 128) f32 come from
    fuse_mlp_params (fused / padded / cast once at init, not per call)."""
    batch, in_f = x.shape
    out_p = w_fused.shape[1]

    tb = _pick_batch_tile(batch, block_batch)
    batch_p = _round_up(batch, tb)
    grid = (batch_p // tb,)

    # Only the batch dim is padded (to a tile multiple); K=20 stays un-padded.
    x_b = x.astype(jnp.bfloat16)
    if batch_p != batch:
        x_b = jnp.pad(x_b, ((0, batch_p - batch), (0, 0)))

    out = pl.pallas_call(
        mlp_kernel,
        out_shape=jax.ShapeDtypeStruct((batch_p, out_p), jnp.bfloat16),
        grid=grid,
        in_specs=[
            pl.BlockSpec((tb, in_f), lambda i: (i, 0)),      # batch-tiled x, K=20
            pl.BlockSpec((in_f, out_p), lambda i: (0, 0)),   # resident fused W (~5 KiB)
            pl.BlockSpec((1, out_p), lambda i: (0, 0)),      # resident fused b (f32)
        ],
        out_specs=pl.BlockSpec((tb, out_p), lambda i: (i, 0)),
        compiler_params=pltpu.CompilerParams(
            dimension_semantics=("parallel",)),
    )(x_b, w_fused, b_fused)

    return out[:batch, :out_features].astype(x.dtype)


def init_params(key, in_f=20, hid=256, out_f=10, dtype=jnp.float32):
    # Mimics nn.Linear default init: U(-1/sqrt(fan_in), 1/sqrt(fan_in)).
    k1, k2, k3, k4 = jax.random.split(key, 4)
    bound1 = 1.0 / jnp.sqrt(in_f)
    bound2 = 1.0 / jnp.sqrt(hid)
    w1 = jax.random.uniform(k1, (in_f, hid), dtype, -bound1, bound1)
    b1 = jax.random.uniform(k2, (1, hid), dtype, -bound1, bound1)
    w2 = jax.random.uniform(k3, (hid, out_f), dtype, -bound2, bound2)
    b2 = jax.random.uniform(k4, (1, out_f), dtype, -bound2, bound2)
    return w1, b1, w2, b2


if __name__ == "__main__":
    key = jax.random.PRNGKey(0)
    kx, kp = jax.random.split(key)
    x = jax.random.uniform(kx, (2, 20), jnp.float32)   # matches torch.rand(2, 20)
    w1, b1, w2, b2 = init_params(kp)

    # One-time parameter prep (fuse + pad + cast), then the fused forward.
    w_fused, b_fused, out_f = fuse_mlp_params(w1, b1, w2, b2)
    y = mlp_forward(x, w_fused, b_fused, out_features=out_f)
    jax.block_until_ready(y)
    assert y.shape == (2, 10)

    # Reference 1: identical fused arithmetic (bf16 operands, f32 acc, bf16 store).
    wf_ref = jnp.dot(w1, w2).astype(jnp.bfloat16)
    bf_ref = jnp.dot(b1, w2) + b2
    y_ref = jnp.maximum(
        jnp.dot(x.astype(jnp.bfloat16), wf_ref,
                preferred_element_type=jnp.float32) + bf_ref, 0.0
    ).astype(jnp.bfloat16).astype(jnp.float32)
    assert jnp.allclose(y, y_ref, atol=2e-2, rtol=2e-2)

    # Reference 2: pure f32 math of the original module semantics:
    # relu((x @ w1 + b1) @ w2 + b2)  (looser tol: bf16 operands + bf16 store).
    y_f32 = jnp.maximum((x @ w1 + b1) @ w2 + b2, 0.0)
    assert jnp.allclose(y, y_f32, atol=5e-2, rtol=5e-2)

    print("KERNEL_OK")
</pallas_src>

<mosaic_0001>
module attributes {stable_mosaic.version = 11 : i64} {
  func.func @mlp_kernel(%arg0: i32, %arg1: memref<16x20xbf16, #tpu.memory_space<vmem>>, %arg2: memref<20x128xbf16, #tpu.memory_space<vmem>>, %arg3: memref<1x128xf32, #tpu.memory_space<vmem>>, %arg4: memref<16x128xbf16, #tpu.memory_space<vmem>>) attributes {dimension_semantics = [#tpu.dimension_semantics<parallel>], iteration_bounds = array<i64: 1>, scalar_prefetch = 0 : i64, scratch_operands = 0 : i64, tpu.core_type = #tpu.core_type<tc>, window_params = [{transform_indices = @transform_0, window_bounds = array<i64: 16, 20>}, {pipeline_mode = #tpu.pipeline_mode<synchronous>, transform_indices = @transform_1, window_bounds = array<i64: 20, 128>}, {pipeline_mode = #tpu.pipeline_mode<synchronous>, transform_indices = @transform_2, window_bounds = array<i64: 1, 128>}, {transform_indices = @transform_3, window_bounds = array<i64: 16, 128>}]} {
    %c0 = arith.constant 0 : index
    %c0_0 = arith.constant 0 : index
    %0 = vector.load %arg1[%c0, %c0_0] : memref<16x20xbf16, #tpu.memory_space<vmem>>, vector<16x20xbf16>
    %c0_1 = arith.constant 0 : index
    %c0_2 = arith.constant 0 : index
    %1 = vector.load %arg2[%c0_1, %c0_2] : memref<20x128xbf16, #tpu.memory_space<vmem>>, vector<20x128xbf16>
    %cst = arith.constant dense<0.000000e+00> : vector<16x128xf32>
    %2 = tpu.matmul %0, %1, %cst {dimension_numbers = #tpu.dot_dimension_numbers<[1], [0], [0], [1], [0, 0, 1, 1], [], []>} : vector<16x20xbf16>, vector<20x128xbf16>, vector<16x128xf32> -> vector<16x128xf32>
    %c0_3 = arith.constant 0 : index
    %c0_4 = arith.constant 0 : index
    %3 = vector.load %arg3[%c0_3, %c0_4] : memref<1x128xf32, #tpu.memory_space<vmem>>, vector<1x128xf32>
    %4 = vector.broadcast %3 : vector<1x128xf32> to vector<16x128xf32>
    %5 = arith.addf %2, %4 : vector<16x128xf32>
    %cst_5 = arith.constant 0.000000e+00 : f32
    %6 = vector.broadcast %cst_5 : f32 to vector<16x128xf32>
    %7 = arith.maximumf %5, %6 : vector<16x128xf32>
    %8 = arith.truncf %7 : vector<16x128xf32> to vector<16x128xbf16>
    %c0_6 = arith.constant 0 : index
    %c0_7 = arith.constant 0 : index
    %9 = vector.load %arg4[%c0_6, %c0_7] : memref<16x128xbf16, #tpu.memory_space<vmem>>, vector<16x128xbf16>
    tpu.vector_store %arg4[%c0_6, %c0_7], %8 {strides = array<i32>} : memref<16x128xbf16, #tpu.memory_space<vmem>>, vector<16x128xbf16>,
    return
  }
  func.func @transform_0(%arg0: i32) -> (i32, i32) {
    %c0_i32 = arith.constant 0 : i32
    %c0_i32_0 = arith.constant 0 : i32
    return %arg0, %c0_i32 : i32, i32
  }
  func.func @transform_1(%arg0: i32) -> (i32, i32) {
    %c0_i32 = arith.constant 0 : i32
    %c0_i32_0 = arith.constant 0 : i32
    %c0_i32_1 = arith.constant 0 : i32
    return %c0_i32, %c0_i32_0 : i32, i32
  }
  func.func @transform_2(%arg0: i32) -> (i32, i32) {
    %c0_i32 = arith.constant 0 : i32
    %c0_i32_0 = arith.constant 0 : i32
    %c0_i32_1 = arith.constant 0 : i32
    return %c0_i32, %c0_i32_0 : i32, i32
  }
  func.func @transform_3(%arg0: i32) -> (i32, i32) {
    %c0_i32 = arith.constant 0 : i32
    %c0_i32_0 = arith.constant 0 : i32
    return %arg0, %c0_i32 : i32, i32
  }
}

</mosaic_0001>

<bundles_post_ra>
// kernel: mlp_forward.1
= control target key start
LH: loop header
LB: loop body
LE: loop exit
PB: predicated region body
PF: predicated region fallthrough
CT: control target
= control target key end

     0   :  { %vm42_vm0 = vcmask 1041408   ;;  %vm38_vm1 = vcmask 162816   ;;  %s122_s1 = inlined_call_operand.vmem [shape: bf16[20,128], index: 1, kind: input, shape index: {}]   ;;  %s123_s2 = inlined_call_operand.vmem [shape: f32[1,128], index: 2, kind: input, shape index: {}]   ;;  %s124_s0 = inlined_call_operand.vmem [shape: bf16[16,20], index: 0, kind: input, shape index: {}]   ;;  %s125_s3 = inlined_call_operand.vmem [shape: bf16[16,128], index: 3, kind: output, shape index: {}]  }
   0x1   :  { %v19_v0 = vld [vmem:[%s122_s1 + $0x8] sm:$0x3]  ;;  %v80_v4 = vld [vmem:[%s122_s1] sm:$0xff] }
   0x2   :  { %v34_v1 = vunpack.c.l.b16 %v19_v0  ;;  %v79_v5 = vld [vmem:[%s124_s0] sm:$0xff] }
   0x3   :  { %v86_v7 = vld [vmem:[%s123_s2] ss:$0 sm:$0xff] }
   0x4   :  { %v36_v2 = vpack.c.b16 %v34_v1, %v34_v1 }
   0x6   :  { %v44_v3 = vsel %vm42_vm0, %v36_v2, 0 }
   0x7   :  { %52 = vmatpush.bf16.msra.mxu0 %v44_v3 }
   0xb   :  { %53 = vmatpush.bf16.msra.mxu0 %v80_v4 }
   0xe   :  { %78 = vmatmul.msk.bf16.vlgmr.msra.gmra.mxu0 %vm38_vm1, %v79_v5 }
  0x8b   :  { %v55_v6 = vpop.f32.mrf.mxu0 }
  0x8c   :  { %v56_v8 = vadd.f32 %v86_v7, %v55_v6 }
  0x8e   :  { %v60_v11 = vmax.f32 %v56_v8, 0.0 }
  0x93   :  { %v57_v9 = vpop.f32.mrf.mxu0 }
  0x94   :  { %v58_v10 = vadd.f32 %v86_v7, %v57_v9 }
  0x96   :  { %v61_v12 = vmax.f32 %v58_v10, 0.0 }
  0x98   :  { %v84_v13 = vpack.c.bf16 %v61_v12, %v60_v11 }
  0x9a   :  { %85 = vst [vmem:[%s125_s3] sm:$0xff] %v84_v13  }

</bundles_post_ra>
